<compile_context>
chip_gen: v7x
topology: tpu7x:2x2x1
jax: 0.10.0
libtpu: 0.0.40
codegen_flags: <defaults>
</compile_context>

<pallas_src>
import functools

import jax
import jax.numpy as jnp
from jax.experimental import pallas as pl
from jax.experimental.pallas import tpu as pltpu


def _flash_mha_kernel(q_ref, k_ref, v_ref, o_ref,
                      qs_ref, m_ref, l_ref, acc_ref, *,
                      scale, kv_tile, seq_len, compute_dtype, mask_kv):
    """One (head-group, q-tile, kv-tile) step of online-softmax attention.

    q_ref:  (G, TQ, D)    k_ref / v_ref: (G, TKV, D)    o_ref: (G, TQ, D)
    qs_ref: (G, TQ, D) compute_dtype (scaled q, written once per q tile)
    m_ref/l_ref: (G, TQ, 1) f32      acc_ref: (G, TQ, D) f32
    """
    kv_idx = pl.program_id(2)

    @pl.when(kv_idx == 0)
    def _init():
        # Hoisted out of the kv loop: the q tile is resident across the whole
        # kv axis, so scale (and the bf16 cast) happen once per q tile.
        qs_ref[...] = (q_ref[...].astype(jnp.float32) * scale).astype(
            compute_dtype)
        m_ref[...] = jnp.full(m_ref.shape, -jnp.inf, jnp.float32)
        l_ref[...] = jnp.zeros(l_ref.shape, jnp.float32)
        acc_ref[...] = jnp.zeros(acc_ref.shape, jnp.float32)

    q = qs_ref[...]
    k = k_ref[...].astype(compute_dtype)
    v = v_ref[...].astype(compute_dtype)

    # scores: (G, TQ, D) x (G, TKV, D) -> (G, TQ, TKV); contraction on the last
    # dims of both operands (no k-tile transpose materialized), f32 MXU acc.
    s = jax.lax.dot_general(
        q, k, (((2,), (2,)), ((0,), (0,))),
        preferred_element_type=jnp.float32)

    if mask_kv:
        # Only emitted when the kv axis is padded: mask padded key columns.
        kv_pos = kv_idx * kv_tile + jax.lax.broadcasted_iota(
            jnp.int32, s.shape, dimension=2)
        s = jnp.where(kv_pos < seq_len, s, -1e30)

    m_prev = m_ref[...]
    m_new = jnp.maximum(m_prev, jnp.max(s, axis=-1, keepdims=True))
    alpha = jnp.exp(m_prev - m_new)                      # (G, TQ, 1)
    p = jnp.exp(s - m_new)                               # (G, TQ, TKV)

    l_ref[...] = alpha * l_ref[...] + jnp.sum(p, axis=-1, keepdims=True)
    acc_ref[...] = alpha * acc_ref[...] + jax.lax.dot_general(
        p.astype(compute_dtype), v, (((2,), (1,)), ((0,), (0,))),
        preferred_element_type=jnp.float32)              # (G, TQ, D)
    m_ref[...] = m_new

    @pl.when(kv_idx == pl.num_programs(2) - 1)
    def _finalize():
        # Once per (head-group, q-tile): exact reciprocal is effectively free
        # here and keeps the f32-operand path numerically tight.
        inv_l = pl.reciprocal(l_ref[...], approx=False)
        o_ref[...] = (acc_ref[...] * inv_l).astype(o_ref.dtype)


def _round_up(x: int, m: int) -> int:
    return ((x + m - 1) // m) * m


def _largest_divisor_leq(n: int, cap: int) -> int:
    cap = max(1, min(cap, n))
    for g in range(cap, 0, -1):
        if n % g == 0:
            return g
    return 1


def multi_head_attention(query_key_value: jax.Array, num_heads: int, *,
                         mxu_dtype=None) -> jax.Array:
    """Pallas implementation of the PyTorch MultiHeadAttention.forward.

    Args:
      query_key_value: (B, S, 3*E) array.
      num_heads: number of attention heads H (E % H == 0).
      mxu_dtype: dtype of the matmul operands.  None (default) -> bfloat16 when
        the input is float32 (native MXU rate; usual flash-attention bf16
        accuracy trade-off), otherwise the input dtype.  Pass jnp.float32 for
        full-precision operands.

    Returns:
      (B, H, S, E // H) attention output (same as the PyTorch module).
    """
    batch_size, seq_length, projected_dim = query_key_value.shape
    embedding_dim = projected_dim // 3
    assert embedding_dim * 3 == projected_dim
    assert embedding_dim % num_heads == 0
    head_dim = embedding_dim // num_heads
    scale = head_dim ** (-0.5)
    bh = batch_size * num_heads
    in_dtype = query_key_value.dtype

    if mxu_dtype is None:
        compute_dtype = jnp.bfloat16 if in_dtype == jnp.float32 else in_dtype
    else:
        compute_dtype = jnp.dtype(mxu_dtype)

    # --- Head packing: G heads per grid step (lane utilisation for D < 128).
    lane_pack = max(1, 128 // max(1, head_dim))
    group = _largest_divisor_leq(bh, min(lane_pack, 8))
    n_groups = bh // group

    # --- Tile sizes.  TQ targets 512; TKV targets up to 2048 subject to a
    # VMEM budget for the f32 (G, TQ, TKV) score/prob temps (~8 MiB each).
    # Tiles are multiples of 8; padding + in-kernel masking handles any S.
    n_q = max(1, -(-seq_length // 512))                 # ceil(S / 512)
    tq = _round_up(-(-seq_length // n_q), 8)
    score_budget_elems = (8 * 1024 * 1024) // 4
    kv_target = max(128, min(2048, score_budget_elems // (group * tq)))
    n_kv = max(1, -(-seq_length // kv_target))
    tkv = _round_up(-(-seq_length // n_kv), 8)

    seq_q_pad = n_q * tq
    seq_kv_pad = n_kv * tkv
    seq_in_pad = max(seq_q_pad, seq_kv_pad)
    mask_kv = seq_kv_pad > seq_length

    # --- One layout copy: (B, S, 3E) -> (3, B*H, S_pad, D).  q/k/v planes and
    # heads are then selected purely via BlockSpec index_maps.
    qkv = query_key_value.reshape(
        batch_size, seq_length, 3, num_heads, head_dim)
    qkv = jnp.transpose(qkv, (2, 0, 3, 1, 4)).reshape(
        3, bh, seq_length, head_dim)
    if seq_in_pad > seq_length:
        qkv = jnp.pad(
            qkv, ((0, 0), (0, 0), (0, seq_in_pad - seq_length), (0, 0)))

    q_spec = pl.BlockSpec((None, group, tq, head_dim),
                          lambda g, qi, ki: (0, g, qi, 0))
    k_spec = pl.BlockSpec((None, group, tkv, head_dim),
                          lambda g, qi, ki: (1, g, ki, 0))
    v_spec = pl.BlockSpec((None, group, tkv, head_dim),
                          lambda g, qi, ki: (2, g, ki, 0))
    o_spec = pl.BlockSpec((group, tq, head_dim),
                          lambda g, qi, ki: (g, qi, 0))

    # --- VMEM limit derived from the actual footprint (double-buffered q/k/v
    # and output blocks + scratch + f32 score/prob temps), capped v7x-safe.
    itemsize = jnp.dtype(in_dtype).itemsize
    c_size = jnp.dtype(compute_dtype).itemsize
    block_bytes = (group * tq * head_dim
                   + 2 * group * tkv * head_dim) * itemsize
    out_bytes = group * tq * head_dim * itemsize
    scratch_bytes = group * tq * ((2 + head_dim) * 4 + head_dim * c_size)
    temp_bytes = 3 * group * tq * tkv * 4
    vmem_limit = 2 * (block_bytes + out_bytes) + scratch_bytes + temp_bytes
    vmem_limit = int(min(max(vmem_limit + (2 << 20), 16 << 20), 48 << 20))

    kernel = functools.partial(
        _flash_mha_kernel, scale=scale, kv_tile=tkv, seq_len=seq_length,
        compute_dtype=compute_dtype, mask_kv=mask_kv)

    out = pl.pallas_call(
        kernel,
        out_shape=jax.ShapeDtypeStruct((bh, seq_q_pad, head_dim), in_dtype),
        grid=(n_groups, n_q, n_kv),
        in_specs=[q_spec, k_spec, v_spec],
        out_specs=o_spec,
        scratch_shapes=[
            pltpu.VMEM((group, tq, head_dim), compute_dtype),  # scaled q
            pltpu.VMEM((group, tq, 1), jnp.float32),           # running max m
            pltpu.VMEM((group, tq, 1), jnp.float32),           # running sum l
            pltpu.VMEM((group, tq, head_dim), jnp.float32),    # accumulator
        ],
        compiler_params=pltpu.CompilerParams(
            # Two parallel axes for megacore sharding (v7x); kv is the
            # online-softmax reduction axis.
            dimension_semantics=("parallel", "parallel", "arbitrary"),
            vmem_limit_bytes=vmem_limit,
        ),
    )(qkv, qkv, qkv)

    out = out.reshape(batch_size, num_heads, seq_q_pad, head_dim)
    if seq_q_pad > seq_length:
        out = out[:, :, :seq_length, :]
    return out


def _reference(query_key_value, num_heads):
    b, s, pd = query_key_value.shape
    e = pd // 3
    d = e // num_heads
    scale = d ** (-0.5)
    qkv = query_key_value.reshape(b, s, 3, num_heads, d)
    qkv = jnp.transpose(qkv, (0, 3, 2, 1, 4))
    q, k, v = qkv[:, :, 0], qkv[:, :, 1], qkv[:, :, 2]
    scores = jnp.einsum("bhqd,bhkd->bhqk", q, k) * scale
    probs = jax.nn.softmax(scores, axis=-1)
    return jnp.einsum("bhqk,bhkd->bhqd", probs, v)


if __name__ == "__main__":
    # Small shapes consistent with the module's forward:
    # batch=2, seq=8, num_heads=4, head_dim=8 -> embedding_dim=32, projected=96
    batch, seq, num_heads, head_dim = 2, 8, 4, 8
    projected_dim = 3 * num_heads * head_dim

    key = jax.random.PRNGKey(0)
    qkv_in = jax.random.normal(key, (batch, seq, projected_dim),
                               dtype=jnp.float32)
    ref = _reference(qkv_in, num_heads)

    # Default path: bf16 MXU operands (native MXU rate). Documented bf16
    # flash-attention accuracy trade-off -> loose tolerance.
    out_bf16 = jax.block_until_ready(multi_head_attention(qkv_in, num_heads))
    assert out_bf16.shape == (batch, num_heads, seq, head_dim)
    err_bf16 = float(jnp.max(jnp.abs(out_bf16 - ref)))
    assert err_bf16 < 5e-2, f"bf16-operand path error too large: {err_bf16}"

    # Full-precision operand path for a tighter numerics check.
    out_f32 = jax.block_until_ready(
        multi_head_attention(qkv_in, num_heads, mxu_dtype=jnp.float32))
    err_f32 = float(jnp.max(jnp.abs(out_f32 - ref)))
    assert err_f32 < 2e-2, f"f32-operand path error too large: {err_f32}"

    # Exercise the padding + kv-masking path (seq not a multiple of the tile).
    b2, s2, h2, d2 = 1, 12, 2, 16
    qkv2 = jax.random.normal(jax.random.PRNGKey(0), (b2, s2, 3 * h2 * d2),
                             dtype=jnp.float32)
    out2 = jax.block_until_ready(multi_head_attention(qkv2, h2))
    ref2 = _reference(qkv2, h2)
    assert out2.shape == (b2, h2, s2, d2)
    err2 = float(jnp.max(jnp.abs(out2 - ref2)))
    assert err2 < 5e-2, f"masked/padded path error too large: {err2}"

    print("KERNEL_OK")
</pallas_src>

<mosaic_0001>
module attributes {stable_mosaic.version = 11 : i64} {
  func.func @_flash_mha_kernel(%arg0: i32, %arg1: i32, %arg2: i32, %arg3: memref<1x8x8x8xf32, #tpu.memory_space<vmem>>, %arg4: memref<1x8x8x8xf32, #tpu.memory_space<vmem>>, %arg5: memref<1x8x8x8xf32, #tpu.memory_space<vmem>>, %arg6: memref<8x8x8xf32, #tpu.memory_space<vmem>>, %arg7: memref<8x8x8xbf16, #tpu.memory_space<vmem>>, %arg8: memref<8x8x1xf32, #tpu.memory_space<vmem>>, %arg9: memref<8x8x1xf32, #tpu.memory_space<vmem>>, %arg10: memref<8x8x8xf32, #tpu.memory_space<vmem>>) attributes {dimension_semantics = [#tpu.dimension_semantics<parallel>, #tpu.dimension_semantics<parallel>, #tpu.dimension_semantics<arbitrary>], iteration_bounds = array<i64: 1, 1, 1>, scalar_prefetch = 0 : i64, scratch_operands = 4 : i64, tpu.core_type = #tpu.core_type<tc>, window_params = [{transform_indices = @transform_0, window_bounds = array<i64: 1, 8, 8, 8>}, {transform_indices = @transform_1, window_bounds = array<i64: 1, 8, 8, 8>}, {transform_indices = @transform_2, window_bounds = array<i64: 1, 8, 8, 8>}, {transform_indices = @transform_3, window_bounds = array<i64: 8, 8, 8>}]} {
    %c0_i32 = arith.constant 0 : i32
    %0 = arith.cmpi eq, %arg2, %c0_i32 : i32
    %1 = arith.extui %0 : i1 to i32
    %c0_i32_0 = arith.constant 0 : i32
    %2 = arith.cmpi ne, %1, %c0_i32_0 : i32
    scf.if %2 {
      %c0_34 = arith.constant 0 : index
      %c0_35 = arith.constant 0 : index
      %c0_36 = arith.constant 0 : index
      %c0_37 = arith.constant 0 : index
      %37 = vector.load %arg3[%c0_34, %c0_35, %c0_36, %c0_37] : memref<1x8x8x8xf32, #tpu.memory_space<vmem>>, vector<1x8x8x8xf32>
      %38 = vector.shape_cast %37 : vector<1x8x8x8xf32> to vector<8x8x8xf32>
      %cst_38 = arith.constant 0.353553385 : f32
      %39 = vector.broadcast %cst_38 : f32 to vector<8x8x8xf32>
      %40 = arith.mulf %38, %39 : vector<8x8x8xf32>
      %41 = arith.truncf %40 : vector<8x8x8xf32> to vector<8x8x8xbf16>
      %c0_39 = arith.constant 0 : index
      %c0_40 = arith.constant 0 : index
      %c0_41 = arith.constant 0 : index
      %42 = vector.load %arg7[%c0_39, %c0_40, %c0_41] : memref<8x8x8xbf16, #tpu.memory_space<vmem>>, vector<8x8x8xbf16>
      tpu.vector_store %arg7[%c0_39, %c0_40, %c0_41], %41 {strides = array<i32>} : memref<8x8x8xbf16, #tpu.memory_space<vmem>>, vector<8x8x8xbf16>,
      %cst_42 = arith.constant 0xFF800000 : f32
      %43 = vector.broadcast %cst_42 : f32 to vector<8x8x1xf32>
      %c0_43 = arith.constant 0 : index
      %c0_44 = arith.constant 0 : index
      %c0_45 = arith.constant 0 : index
      %44 = vector.load %arg8[%c0_43, %c0_44, %c0_45] : memref<8x8x1xf32, #tpu.memory_space<vmem>>, vector<8x8x1xf32>
      tpu.vector_store %arg8[%c0_43, %c0_44, %c0_45], %43 {strides = array<i32>} : memref<8x8x1xf32, #tpu.memory_space<vmem>>, vector<8x8x1xf32>,
      %cst_46 = arith.constant 0.000000e+00 : f32
      %45 = vector.broadcast %cst_46 : f32 to vector<8x8x1xf32>
      %c0_47 = arith.constant 0 : index
      %c0_48 = arith.constant 0 : index
      %c0_49 = arith.constant 0 : index
      %46 = vector.load %arg9[%c0_47, %c0_48, %c0_49] : memref<8x8x1xf32, #tpu.memory_space<vmem>>, vector<8x8x1xf32>
      tpu.vector_store %arg9[%c0_47, %c0_48, %c0_49], %45 {strides = array<i32>} : memref<8x8x1xf32, #tpu.memory_space<vmem>>, vector<8x8x1xf32>,
      %cst_50 = arith.constant 0.000000e+00 : f32
      %47 = vector.broadcast %cst_50 : f32 to vector<8x8x8xf32>
      %c0_51 = arith.constant 0 : index
      %c0_52 = arith.constant 0 : index
      %c0_53 = arith.constant 0 : index
      %48 = vector.load %arg10[%c0_51, %c0_52, %c0_53] : memref<8x8x8xf32, #tpu.memory_space<vmem>>, vector<8x8x8xf32>
      tpu.vector_store %arg10[%c0_51, %c0_52, %c0_53], %47 {strides = array<i32>} : memref<8x8x8xf32, #tpu.memory_space<vmem>>, vector<8x8x8xf32>,
    } else {
    }
    %c0 = arith.constant 0 : index
    %c0_1 = arith.constant 0 : index
    %c0_2 = arith.constant 0 : index
    %3 = vector.load %arg7[%c0, %c0_1, %c0_2] : memref<8x8x8xbf16, #tpu.memory_space<vmem>>, vector<8x8x8xbf16>
    %c0_3 = arith.constant 0 : index
    %c0_4 = arith.constant 0 : index
    %c0_5 = arith.constant 0 : index
    %c0_6 = arith.constant 0 : index
    %4 = vector.load %arg4[%c0_3, %c0_4, %c0_5, %c0_6] : memref<1x8x8x8xf32, #tpu.memory_space<vmem>>, vector<1x8x8x8xf32>
    %5 = vector.shape_cast %4 : vector<1x8x8x8xf32> to vector<8x8x8xf32>
    %6 = arith.truncf %5 : vector<8x8x8xf32> to vector<8x8x8xbf16>
    %c0_7 = arith.constant 0 : index
    %c0_8 = arith.constant 0 : index
    %c0_9 = arith.constant 0 : index
    %c0_10 = arith.constant 0 : index
    %7 = vector.load %arg5[%c0_7, %c0_8, %c0_9, %c0_10] : memref<1x8x8x8xf32, #tpu.memory_space<vmem>>, vector<1x8x8x8xf32>
    %8 = vector.shape_cast %7 : vector<1x8x8x8xf32> to vector<8x8x8xf32>
    %9 = arith.truncf %8 : vector<8x8x8xf32> to vector<8x8x8xbf16>
    %cst = arith.constant dense<0.000000e+00> : vector<8x8x8xf32>
    %10 = tpu.matmul %3, %6, %cst {dimension_numbers = #tpu.dot_dimension_numbers<[2], [2], [1], [1], [0, 0, 0, 1, 1, 1], [0], [0]>} : vector<8x8x8xbf16>, vector<8x8x8xbf16>, vector<8x8x8xf32> -> vector<8x8x8xf32>
    %c0_11 = arith.constant 0 : index
    %c0_12 = arith.constant 0 : index
    %c0_13 = arith.constant 0 : index
    %11 = vector.load %arg8[%c0_11, %c0_12, %c0_13] : memref<8x8x1xf32, #tpu.memory_space<vmem>>, vector<8x8x1xf32>
    %cst_14 = arith.constant dense<0xFF800000> : vector<8x8xf32>
    %12 = vector.multi_reduction <maximumf>, %10, %cst_14 [2] : vector<8x8x8xf32> to vector<8x8xf32>
    %13 = vector.shape_cast %12 : vector<8x8xf32> to vector<8x8x1xf32>
    %14 = arith.maximumf %11, %13 : vector<8x8x1xf32>
    %15 = arith.subf %11, %14 : vector<8x8x1xf32>
    %16 = math.exp %15 : vector<8x8x1xf32>
    %17 = vector.broadcast %14 : vector<8x8x1xf32> to vector<8x8x8xf32>
    %18 = arith.subf %10, %17 : vector<8x8x8xf32>
    %19 = math.exp %18 : vector<8x8x8xf32>
    %c0_15 = arith.constant 0 : index
    %c0_16 = arith.constant 0 : index
    %c0_17 = arith.constant 0 : index
    %20 = vector.load %arg9[%c0_15, %c0_16, %c0_17] : memref<8x8x1xf32, #tpu.memory_space<vmem>>, vector<8x8x1xf32>
    %21 = arith.mulf %16, %20 : vector<8x8x1xf32>
    %cst_18 = arith.constant dense<0.000000e+00> : vector<8x8xf32>
    %22 = vector.multi_reduction <add>, %19, %cst_18 [2] : vector<8x8x8xf32> to vector<8x8xf32>
    %23 = vector.shape_cast %22 : vector<8x8xf32> to vector<8x8x1xf32>
    %24 = arith.addf %21, %23 : vector<8x8x1xf32>
    %c0_19 = arith.constant 0 : index
    %c0_20 = arith.constant 0 : index
    %c0_21 = arith.constant 0 : index
    %25 = vector.load %arg9[%c0_19, %c0_20, %c0_21] : memref<8x8x1xf32, #tpu.memory_space<vmem>>, vector<8x8x1xf32>
    tpu.vector_store %arg9[%c0_19, %c0_20, %c0_21], %24 {strides = array<i32>} : memref<8x8x1xf32, #tpu.memory_space<vmem>>, vector<8x8x1xf32>,
    %c0_22 = arith.constant 0 : index
    %c0_23 = arith.constant 0 : index
    %c0_24 = arith.constant 0 : index
    %26 = vector.load %arg10[%c0_22, %c0_23, %c0_24] : memref<8x8x8xf32, #tpu.memory_space<vmem>>, vector<8x8x8xf32>
    %27 = vector.broadcast %16 : vector<8x8x1xf32> to vector<8x8x8xf32>
    %28 = arith.mulf %27, %26 : vector<8x8x8xf32>
    %29 = arith.truncf %19 : vector<8x8x8xf32> to vector<8x8x8xbf16>
    %cst_25 = arith.constant dense<0.000000e+00> : vector<8x8x8xf32>
    %30 = tpu.matmul %29, %9, %cst_25 {dimension_numbers = #tpu.dot_dimension_numbers<[2], [1], [1], [2], [0, 0, 0, 1, 1, 2], [0], [0]>} : vector<8x8x8xbf16>, vector<8x8x8xbf16>, vector<8x8x8xf32> -> vector<8x8x8xf32>
    %31 = arith.addf %28, %30 : vector<8x8x8xf32>
    %c0_26 = arith.constant 0 : index
    %c0_27 = arith.constant 0 : index
    %c0_28 = arith.constant 0 : index
    %32 = vector.load %arg10[%c0_26, %c0_27, %c0_28] : memref<8x8x8xf32, #tpu.memory_space<vmem>>, vector<8x8x8xf32>
    tpu.vector_store %arg10[%c0_26, %c0_27, %c0_28], %31 {strides = array<i32>} : memref<8x8x8xf32, #tpu.memory_space<vmem>>, vector<8x8x8xf32>,
    %c0_29 = arith.constant 0 : index
    %c0_30 = arith.constant 0 : index
    %c0_31 = arith.constant 0 : index
    %33 = vector.load %arg8[%c0_29, %c0_30, %c0_31] : memref<8x8x1xf32, #tpu.memory_space<vmem>>, vector<8x8x1xf32>
    tpu.vector_store %arg8[%c0_29, %c0_30, %c0_31], %14 {strides = array<i32>} : memref<8x8x1xf32, #tpu.memory_space<vmem>>, vector<8x8x1xf32>,
    %c0_i32_32 = arith.constant 0 : i32
    %34 = arith.cmpi eq, %arg2, %c0_i32_32 : i32
    %35 = arith.extui %34 : i1 to i32
    %c0_i32_33 = arith.constant 0 : i32
    %36 = arith.cmpi ne, %35, %c0_i32_33 : i32
    scf.if %36 {
      %c0_34 = arith.constant 0 : index
      %c0_35 = arith.constant 0 : index
      %c0_36 = arith.constant 0 : index
      %37 = vector.load %arg9[%c0_34, %c0_35, %c0_36] : memref<8x8x1xf32, #tpu.memory_space<vmem>>, vector<8x8x1xf32>
      %38 = tpu.reciprocal %37 : vector<8x8x1xf32> -> vector<8x8x1xf32>
      %c0_37 = arith.constant 0 : index
      %c0_38 = arith.constant 0 : index
      %c0_39 = arith.constant 0 : index
      %39 = vector.load %arg10[%c0_37, %c0_38, %c0_39] : memref<8x8x8xf32, #tpu.memory_space<vmem>>, vector<8x8x8xf32>
      %40 = vector.broadcast %38 : vector<8x8x1xf32> to vector<8x8x8xf32>
      %41 = arith.mulf %39, %40 : vector<8x8x8xf32>
      %c0_40 = arith.constant 0 : index
      %c0_41 = arith.constant 0 : index
      %c0_42 = arith.constant 0 : index
      %42 = vector.load %arg6[%c0_40, %c0_41, %c0_42] : memref<8x8x8xf32, #tpu.memory_space<vmem>>, vector<8x8x8xf32>
      tpu.vector_store %arg6[%c0_40, %c0_41, %c0_42], %41 {strides = array<i32>} : memref<8x8x8xf32, #tpu.memory_space<vmem>>, vector<8x8x8xf32>,
    } else {
    }
    return
  }
  func.func @transform_0(%arg0: i32, %arg1: i32, %arg2: i32) -> (i32, i32, i32, i32) {
    %c0_i32 = arith.constant 0 : i32
    %c0_i32_0 = arith.constant 0 : i32
    %c0_i32_1 = arith.constant 0 : i32
    return %c0_i32, %arg0, %arg1, %c0_i32_0 : i32, i32, i32, i32
  }
  func.func @transform_1(%arg0: i32, %arg1: i32, %arg2: i32) -> (i32, i32, i32, i32) {
    %c1_i32 = arith.constant 1 : i32
    %c0_i32 = arith.constant 0 : i32
    %c0_i32_0 = arith.constant 0 : i32
    return %c1_i32, %arg0, %arg2, %c0_i32 : i32, i32, i32, i32
  }
  func.func @transform_2(%arg0: i32, %arg1: i32, %arg2: i32) -> (i32, i32, i32, i32) {
    %c2_i32 = arith.constant 2 : i32
    %c0_i32 = arith.constant 0 : i32
    %c0_i32_0 = arith.constant 0 : i32
    return %c2_i32, %arg0, %arg2, %c0_i32 : i32, i32, i32, i32
  }
  func.func @transform_3(%arg0: i32, %arg1: i32, %arg2: i32) -> (i32, i32, i32) {
    %c0_i32 = arith.constant 0 : i32
    %c0_i32_0 = arith.constant 0 : i32
    return %arg0, %arg1, %c0_i32 : i32, i32, i32
  }
}

</mosaic_0001>

<bundles_post_ra>
// kernel: tpu_custom_call.1
= control target key start
LH: loop header
LB: loop body
LE: loop exit
PB: predicated region body
PF: predicated region fallthrough
CT: control target
= control target key end

     0   :  { %8 = vsyncpa [#allocation7], 0  ;;  %s1972_s0 = inlined_call_operand.hbm [shape: f32[3,8,8,8], index: 0, kind: input, shape index: {}]   ;;  %s1973_s1 = inlined_call_operand.hbm [shape: f32[3,8,8,8], index: 1, kind: input, shape index: {}]   ;;  %s1974_s2 = inlined_call_operand.hbm [shape: f32[3,8,8,8], index: 2, kind: input, shape index: {}]   ;;  %s1975_s3 = inlined_call_operand.hbm [shape: f32[8,8,8], index: 3, kind: output, shape index: {}]  }
   0x1   :  { %9 = vsyncpa [#allocation10], 0 }
   0x2   :  { %10 = vsyncpa [#allocation8], 0  ;;  %s28_s14 = scalar_lea.hbm %s1973_s1, 1024  ;;  %s1578_s15 = smov [#allocation9]  }
   0x3   :  { %s29_s16 = sshll.u32 %s1578_s15, 4  ;;  %s1579_s17 = smov [#allocation6]   ;;  %s30_s16 = int_to_ptr.vmem [resolvable:$true] %s29_s16 }
   0x4   :  { %s16_s18 = sshll.u32 %s1579_s17, 4  ;;  %s1502_s21 = scalar_lea.hbm %s1973_s1, 2048  ;;  %s17_s18 = int_to_ptr.vmem [resolvable:$true] %s16_s18 }
   0x5   :  { %p1479_p0 = scmp.ne.s32.totalorder %s28_s14, %s1502_s21  ;;  %s1480_s24 = scalar_lea.hbm %s1973_s1, 3072 }
   0x6   :  { %p1481_p1 = scmp.lt.u32.totalorder %s28_s14, %s1973_s1  ;;  %p1482_p2 = scmp.lt.u32.totalorder %s1480_s24, %s1502_s21 }
   0x7   :  { %p1484_p4 = scmp.lt.u32.totalorder %s1502_s21, %s28_s14 }
   0x8   :  { %p1483_p3 = por %p1482_p2, %p1481_p1 }
   0xa   :  { %p1485_p5 = por %p1484_p4, %p1483_p3 }
   0xc   :  { %p1486_p6 = pnand %p1485_p5, %p1479_p0 }
   0xe   :  { %1489 = shalt.err (!%p1486_p6)
}
   0xf   :  { %s1490_s27 = scalar_lea.vmem %s30_s16, 1024  ;;  %p1495_p8 = scmp.lt.s32.totalorder %s30_s16, %s30_s16 }
  0x10   :  { %p1491_p7 = scmp.ne.s32.totalorder %s30_s16, %s1490_s27  ;;  %p1496_p9 = scmp.lt.s32.totalorder %s1490_s27, %s1490_s27 }
  0x12   :  { %p1497_p10 = por %p1496_p9, %p1495_p8 }
  0x14   :  { %p1498_p11 = pnand %p1497_p10, %p1491_p7 }
  0x16   :  { %1501 = shalt.err (!%p1498_p11)
}
  0x17   :  { %s1580_s28 = smov 128   ;;  %s1581_s29 = smov 8  }
  0x18   :  { %35 = dma.hbm_to_vmem [thread:$0]  %s28_s14, 1024, %s30_s16, [#allocation10], %s1580_s28, %s1580_s28, %s1581_s29  }
  0x19   :  { %s1503_s4 = scalar_lea.hbm %s1972_s0, 1024  ;;  %s1505_s9 = scalar_lea.hbm %s1972_s0, 3072 }
  0x1a   :  { %p1504_p12 = scmp.ne.s32.totalorder %s1972_s0, %s1503_s4  ;;  %p1506_p13 = scmp.lt.u32.totalorder %s1505_s9, %s1503_s4 }
  0x1b   :  { %p1507_p0 = scmp.lt.u32.totalorder %s1503_s4, %s1972_s0 }
  0x1d   :  { %p1508_p1 = por %p1507_p0, %p1506_p13 }
  0x1f   :  { %p1509_p2 = pnand %p1508_p1, %p1504_p12 }
  0x21   :  { %1512 = shalt.err (!%p1509_p2)
}
  0x22   :  { %s1513_s12 = scalar_lea.vmem %s17_s18, 1024  ;;  %p1518_p4 = scmp.lt.s32.totalorder %s17_s18, %s17_s18 }
  0x23   :  { %p1514_p3 = scmp.ne.s32.totalorder %s17_s18, %s1513_s12  ;;  %p1519_p5 = scmp.lt.s32.totalorder %s1513_s12, %s1513_s12 }
  0x25   :  { %p1520_p6 = por %p1519_p5, %p1518_p4 }
  0x27   :  { %p1521_p7 = pnand %p1520_p6, %p1514_p3 }
  0x29   :  { %1524 = shalt.err (!%p1521_p7)
}
  0x2a   :  { %22 = dma.hbm_to_vmem [thread:$0]  %s1972_s0, 1024, %s17_s18, [#allocation7], %s1580_s28, %s1580_s28, %s1581_s29  }
  0x2b   :  { %s41_s17 = scalar_lea.hbm %s1974_s2, 2048  ;;  %s1582_s19 = smov [#allocation11]  }
  0x2c   :  { %s42_s20 = sshll.u32 %s1582_s19, 4  ;;  %s1549_s23 = scalar_lea.hbm %s1974_s2, 3072  ;;  %s43_s20 = int_to_ptr.vmem [resolvable:$true] %s42_s20 }
  0x2d   :  { %p1526_p8 = scmp.ne.s32.totalorder %s41_s17, %s1549_s23  ;;  %p1528_p9 = scmp.lt.u32.totalorder %s41_s17, %s1974_s2 }
  0x2e   :  { %p1529_p10 = scmp.lt.u32.totalorder %s1549_s23, %s1549_s23  ;;  %p1531_p12 = scmp.lt.u32.totalorder %s1549_s23, %s41_s17 }
  0x30   :  { %p1530_p11 = por %p1529_p10, %p1528_p9 }
  0x32   :  { %p1532_p13 = por %p1531_p12, %p1530_p11 }
  0x34   :  { %p1533_p0 = pnand %p1532_p13, %p1526_p8 }
  0x36   :  { %1536 = shalt.err (!%p1533_p0)
}
  0x37   :  { %s1537_s0 = scalar_lea.vmem %s43_s20, 1024  ;;  %p1542_p2 = scmp.lt.s32.totalorder %s43_s20, %s43_s20 }
  0x38   :  { %p1538_p1 = scmp.ne.s32.totalorder %s43_s20, %s1537_s0  ;;  %p1543_p3 = scmp.lt.s32.totalorder %s1537_s0, %s1537_s0 }
  0x3a   :  { %p1544_p4 = por %p1543_p3, %p1542_p2 }
  0x3c   :  { %p1545_p5 = pnand %p1544_p4, %p1538_p1 }
  0x3e   :  { %1548 = shalt.err (!%p1545_p5)
}
  0x3f   :  { %48 = dma.hbm_to_vmem [thread:$0]  %s41_s17, 1024, %s43_s20, [#allocation10], %s1580_s28, %s1580_s28, %s1581_s29  }
  0x40   :  { %1572 = dma.done.wait [#allocation7], 1024  }
  0x41   :  { %1573 = vsyncadd [#allocation7], 4294966272 }
  0x42   :  { %1574 = dma.done.wait [#allocation10], 2048  }
  0x43   :  { %1575 = vsyncadd [#allocation10], 4294965248  ;;  %vm113_vm0 = vcmask 64512   ;;  %v1583_v0 = vmov 0.0   ;;  %vm1584_vm1 = vmmov 0   ;;  %v130_v1 = vld [vmem:[#allocation9] sm:$0xff] }
  0x44   :  { %1322 = vmatprep.subr.bf16.mxu0 %v1583_v0  ;;  %114 = vst.msk [vmem:[#allocation5] sm:$0xff] %vm113_vm0, %v1583_v0  ;;  %115 = vst.msk [vmem:[#allocation5 + $0x8] sm:$0xff] %vm113_vm0, %v1583_v0  ;;  %1328 = vmatprep.subr.bf16.mxu1 %v1583_v0  ;;  %v131_v2 = vld [vmem:[#allocation9 + $0x8] sm:$0xff]  ;;  %v63_v3 = vld [vmem:[#allocation6] sm:$0xff]  ;;  %v138_v4 = vpack.c.bf16 %v130_v1, %v130_v1  ;;  %vm87_vm2 = vcmask 60416   ;;  %vm96_vm3 = vcmask 7168  }
  0x45   :  { %116 = vst.msk [vmem:[#allocation5 + $0x10] sm:$0xff] %vm113_vm0, %v1583_v0  ;;  %117 = vst.msk [vmem:[#allocation5 + $0x18] sm:$0xff] %vm113_vm0, %v1583_v0  ;;  %1324 = vmatprep.mubr.msk.bf16.mxu0 %vm1584_vm1, %v1583_v0  ;;  %1330 = vmatprep.mubr.msk.bf16.mxu1 %vm1584_vm1, %v1583_v0  ;;  %v139_v5 = vpack.c.bf16 %v131_v2, %v131_v2  ;;  %v71_v6 = vmul.f32 0.35355338, %v63_v3  ;;  %v64_v7 = vld [vmem:[#allocation6 + $0x8] sm:$0xff]  ;;  %v65_v9 = vld [vmem:[#allocation6 + $0x10] sm:$0xff] }
  0x46   :  { %118 = vst.msk [vmem:[#allocation5 + $0x20] sm:$0xff] %vm113_vm0, %v1583_v0  ;;  %119 = vst.msk [vmem:[#allocation5 + $0x28] sm:$0xff] %vm113_vm0, %v1583_v0  ;;  %v72_v8 = vmul.f32 0.35355338, %v64_v7  ;;  %v66_v10 = vld [vmem:[#allocation6 + $0x18] sm:$0xff]  ;;  %v167_v11 = vsel %vm113_vm0, %v138_v4, 0 }
  0x47   :  { %120 = vst.msk [vmem:[#allocation5 + $0x30] sm:$0xff] %vm113_vm0, %v1583_v0  ;;  %121 = vst.msk [vmem:[#allocation5 + $0x38] sm:$0xff] %vm113_vm0, %v1583_v0  ;;  %v213_v12 = vsel %vm113_vm0, %v139_v5, 0  ;;  %v79_v13 = vpack.c.bf16 %v71_v6, %v71_v6  ;;  %v73_v14 = vmul.f32 0.35355338, %v65_v9  ;;  %v67_v15 = vld [vmem:[#allocation6 + $0x20] sm:$0xff]  ;;  %1323 = vmatpush3.bf16.xpose.msra.mxu0 %v167_v11 }
  0x48   :  { %1329 = vmatpush3.bf16.xpose.msra.mxu1 %v213_v12  ;;  %v132_v16 = vld [vmem:[#allocation9 + $0x10] sm:$0xff]  ;;  %v80_v17 = vpack.c.bf16 %v72_v8, %v72_v8  ;;  %v133_v18 = vld [vmem:[#allocation9 + $0x18] sm:$0xff]  ;;  %v68_v19 = vld [vmem:[#allocation6 + $0x28] sm:$0xff]  ;;  %1334 = vmatprep.subr.bf16.mxu0 %v1583_v0  ;;  %v74_v21 = vmul.f32 0.35355338, %v66_v10  ;;  %v1585_v57 = vmov -inf  }
  0x49   :  { %88 = vst.msk [vmem:[#allocation2] sm:$0xf] %vm87_vm2, %v79_v13  ;;  %1340 = vmatprep.subr.bf16.mxu1 %v1583_v0  ;;  %v81_v20 = vpack.c.bf16 %v73_v14, %v73_v14  ;;  %v75_v22 = vmul.f32 0.35355338, %v67_v15  ;;  %v69_v23 = vld [vmem:[#allocation6 + $0x30] sm:$0xff]  ;;  %v70_v24 = vld [vmem:[#allocation6 + $0x38] sm:$0xff]  ;;  %v140_v26 = vpack.c.bf16 %v132_v16, %v132_v16  ;;  %v141_v30 = vpack.c.bf16 %v133_v18, %v133_v18 }
  0x4a   :  { %89 = vst.msk [vmem:[#allocation2 + $0x4] sm:$0xf] %vm87_vm2, %v80_v17  ;;  %v76_v25 = vmul.f32 0.35355338, %v68_v19  ;;  %v82_v27 = vpack.c.bf16 %v74_v21, %v74_v21  ;;  %v77_v29 = vmul.f32 0.35355338, %v69_v23 }
  0x4b   :  { %90 = vst.msk [vmem:[#allocation2 + $0x8] sm:$0xf] %vm87_vm2, %v81_v20  ;;  %v83_v28 = vpack.c.bf16 %v75_v22, %v75_v22  ;;  %v78_v32 = vmul.f32 0.35355338, %v70_v24  ;;  %v259_v35 = vsel %vm113_vm0, %v140_v26, 0  ;;  %v305_v37 = vsel %vm113_vm0, %v141_v30, 0 }
  0x4c   :  { %v84_v31 = vpack.c.bf16 %v76_v25, %v76_v25  ;;  %91 = vst.msk [vmem:[#allocation2 + $0xc] sm:$0xf] %vm87_vm2, %v82_v27  ;;  %v85_v33 = vpack.c.bf16 %v77_v29, %v77_v29  ;;  %v134_v38 = vld [vmem:[#allocation9 + $0x20] sm:$0xff]  ;;  %v135_v40 = vld [vmem:[#allocation9 + $0x28] sm:$0xff]  ;;  %v136_v47 = vld [vmem:[#allocation9 + $0x30] sm:$0xff]  ;;  %v1586_v19 = vmov 0  }
  0x4d   :  { %92 = vst.msk [vmem:[#allocation2 + $0x10] sm:$0xf] %vm87_vm2, %v83_v28  ;;  %v86_v34 = vpack.c.bf16 %v78_v32, %v78_v32  ;;  %v142_v41 = vpack.c.bf16 %v134_v38, %v134_v38  ;;  %v143_v42 = vpack.c.bf16 %v135_v40, %v135_v40  ;;  %v137_v48 = vld [vmem:[#allocation9 + $0x38] sm:$0xff]  ;;  %v144_v49 = vpack.c.bf16 %v136_v47, %v136_v47  ;;  %s1587_s2 = smov [#allocation12]  }
  0x4e   :  { %93 = vst.msk [vmem:[#allocation2 + $0x14] sm:$0xf] %vm87_vm2, %v84_v31  ;;  %94 = vst.msk [vmem:[#allocation2 + $0x18] sm:$0xf] %vm87_vm2, %v85_v33  ;;  %v145_v50 = vpack.c.bf16 %v137_v48, %v137_v48  ;;  %1428 = vset.pattern.permute.xlu0 %v1586_v19  ;;  %1429 = vset.pattern.permute.xlu1 %v1586_v19  ;;  %vm783_vm4 = vcmask 1043456   ;;  %s1261_s18 = sshll.u32 %s1587_s2, 4  ;;  %s1262_s18 = int_to_ptr.vmem [resolvable:$true] %s1261_s18 }
  0x4f   :  { %95 = vst.msk [vmem:[#allocation2 + $0x1c] sm:$0xf] %vm87_vm2, %v86_v34  ;;  %v351_v44 = vsel %vm113_vm0, %v142_v41, 0  ;;  %v397_v46 = vsel %vm113_vm0, %v143_v42, 0  ;;  %v443_v52 = vsel %vm113_vm0, %v144_v49, 0  ;;  %s1550_s26 = scalar_lea.vmem %s1262_s18, 1024  ;;  %p1555_p7 = scmp.lt.s32.totalorder %s1262_s18, %s1262_s18 }
  0x50   :  { %v122_v36 = vld [vmem:[#allocation2] sm:$0xf]  ;;  %v489_v54 = vsel %vm113_vm0, %v145_v50, 0  ;;  %97 = vst.msk [vmem:[#allocation3] sm:$0xff] %vm96_vm3, %v1585_v57  ;;  %98 = vst.msk [vmem:[#allocation3 + $0x8] sm:$0xff] %vm96_vm3, %v1585_v57  ;;  %p1551_p6 = scmp.ne.s32.totalorder %s1262_s18, %s1550_s26  ;;  %p1556_p8 = scmp.lt.s32.totalorder %s1550_s26, %s1550_s26 }
  0x51   :  { %1325 = vmatmul.mubr.msk.bf16.vlgmr.msra.gmra.mrb[0].mxu0 %vm113_vm0, %v122_v36  ;;  %v123_v39 = vld [vmem:[#allocation2 + $0x4] sm:$0xf]  ;;  %99 = vst.msk [vmem:[#allocation3 + $0x10] sm:$0xff] %vm96_vm3, %v1585_v57  ;;  %100 = vst.msk [vmem:[#allocation3 + $0x18] sm:$0xff] %vm96_vm3, %v1585_v57 }
  0x52   :  { %1335 = vmatpush3.bf16.xpose.msra.mxu0 %v259_v35  ;;  %1331 = vmatmul.mubr.msk.bf16.vlgmr.msra.gmra.mrb[0].mxu1 %vm113_vm0, %v123_v39  ;;  %v124_v43 = vld [vmem:[#allocation2 + $0x8] sm:$0xf]  ;;  %101 = vst.msk [vmem:[#allocation3 + $0x20] sm:$0xff] %vm96_vm3, %v1585_v57  ;;  %102 = vst.msk [vmem:[#allocation3 + $0x28] sm:$0xff] %vm96_vm3, %v1585_v57  ;;  %p1557_p9 = por %p1556_p8, %p1555_p7 }
  0x53   :  { %1341 = vmatpush3.bf16.xpose.msra.mxu1 %v305_v37  ;;  %1336 = vmatprep.mubr.msk.bf16.mxu0 %vm1584_vm1, %v1583_v0  ;;  %v125_v45 = vld [vmem:[#allocation2 + $0xc] sm:$0xf]  ;;  %103 = vst.msk [vmem:[#allocation3 + $0x30] sm:$0xff] %vm96_vm3, %v1585_v57  ;;  %104 = vst.msk [vmem:[#allocation3 + $0x38] sm:$0xff] %vm96_vm3, %v1585_v57 }
  0x54   :  { %1346 = vmatprep.subr.bf16.mxu0 %v1583_v0  ;;  %1342 = vmatprep.mubr.msk.bf16.mxu1 %vm1584_vm1, %v1583_v0  ;;  %v126_v51 = vld [vmem:[#allocation2 + $0x10] sm:$0xf]  ;;  %105 = vst.msk [vmem:[#allocation4] sm:$0xff] %vm96_vm3, %v1583_v0  ;;  %106 = vst.msk [vmem:[#allocation4 + $0x8] sm:$0xff] %vm96_vm3, %v1583_v0  ;;  %p1558_p10 = pnand %p1557_p9, %p1551_p6 }
  0x55   :  { %1352 = vmatprep.subr.bf16.mxu1 %v1583_v0  ;;  %v127_v53 = vld [vmem:[#allocation2 + $0x14] sm:$0xf]  ;;  %v128_v55 = vld [vmem:[#allocation2 + $0x18] sm:$0xf]  ;;  %107 = vst.msk [vmem:[#allocation4 + $0x10] sm:$0xff] %vm96_vm3, %v1583_v0  ;;  %108 = vst.msk [vmem:[#allocation4 + $0x18] sm:$0xff] %vm96_vm3, %v1583_v0 }
  0x56   :  { %v129_v56 = vld [vmem:[#allocation2 + $0x1c] sm:$0xf]  ;;  %109 = vst.msk [vmem:[#allocation4 + $0x20] sm:$0xff] %vm96_vm3, %v1583_v0  ;;  %110 = vst.msk [vmem:[#allocation4 + $0x28] sm:$0xff] %vm96_vm3, %v1583_v0 }
  0x57   :  { %111 = vst.msk [vmem:[#allocation4 + $0x30] sm:$0xff] %vm96_vm3, %v1583_v0  ;;  %112 = vst.msk [vmem:[#allocation4 + $0x38] sm:$0xff] %vm96_vm3, %v1583_v0  ;;  %v1779_v36 = vld [vmem:[#allocation3] sm:$0xff]  ;;  %v1784_v39 = vld [vmem:[#allocation3 + $0x8] sm:$0xff] }
  0x58   :  { %v1804_v47 = vld [vmem:[#allocation3 + $0x18] sm:$0xff] }
  0x59   :  { %1337 = vmatmul.mubr.msk.bf16.vlgmr.msra.gmra.mrb[4].mxu0 %vm113_vm0, %v124_v43  ;;  %v1794_v43 = vld [vmem:[#allocation3 + $0x10] sm:$0xff] }
  0x5a   :  { %1347 = vmatpush3.bf16.xpose.msra.mxu0 %v351_v44  ;;  %1343 = vmatmul.mubr.msk.bf16.vlgmr.msra.gmra.mrb[4].mxu1 %vm113_vm0, %v125_v45 }
  0x5b   :  { %1353 = vmatpush3.bf16.xpose.msra.mxu1 %v397_v46  ;;  %1348 = vmatprep.mubr.msk.bf16.mxu0 %vm1584_vm1, %v1583_v0 }
  0x5c   :  { %1358 = vmatprep.subr.bf16.mxu0 %v1583_v0  ;;  %1354 = vmatprep.mubr.msk.bf16.mxu1 %vm1584_vm1, %v1583_v0 }
  0x5d   :  { %1364 = vmatprep.subr.bf16.mxu1 %v1583_v0 }
  0x61   :  { %1349 = vmatmul.mubr.msk.bf16.vlgmr.msra.gmra.mrb[8].mxu0 %vm113_vm0, %v126_v51  ;;  %v146_v51 = vld [vmem:[#allocation11] sm:$0xff] }
  0x62   :  { %1359 = vmatpush3.bf16.xpose.msra.mxu0 %v443_v52  ;;  %1355 = vmatmul.mubr.msk.bf16.vlgmr.msra.gmra.mrb[8].mxu1 %vm113_vm0, %v127_v53  ;;  %v1814_v52 = vld [vmem:[#allocation3 + $0x20] sm:$0xff]  ;;  %v154_v53 = vpack.c.bf16 %v146_v51, %v146_v51 }
  0x63   :  { %1365 = vmatpush3.bf16.xpose.msra.mxu1 %v489_v54  ;;  %1360 = vmatprep.mubr.msk.bf16.mxu0 %vm1584_vm1, %v1583_v0 }
  0x64   :  { %1366 = vmatprep.mubr.msk.bf16.mxu1 %vm1584_vm1, %v1583_v0  ;;  %1370 = vmatprep.subr.bf16.mxu0 %v1583_v0  ;;  %v785_v57 = vsel %vm783_vm4, %v154_v53, 0 }
  0x65   :  { %1376 = vmatprep.subr.bf16.mxu1 %v1583_v0 }
  0x69   :  { %1361 = vmatmul.mubr.msk.bf16.vlgmr.msra.gmra.mrb[12].mxu0 %vm113_vm0, %v128_v55  ;;  %v1821_v55 = vld [vmem:[#allocation3 + $0x28] sm:$0xff] }
  0x6a   :  { %1367 = vmatmul.mubr.msk.bf16.vlgmr.msra.gmra.mrb[12].mxu1 %vm113_vm0, %v129_v56  ;;  %1372 = vmatprep.mubr.msk.bf16.mxu0 %vm1584_vm1, %v1583_v0 }
  0x6b   :  { %1378 = vmatprep.mubr.msk.bf16.mxu1 %vm1584_vm1, %v1583_v0  ;;  %1371 = vmatpush3.bf16.msra.mxu0 %v785_v57 }
  0x6c   :  { %1382 = vmatprep.subr.bf16.mxu0 %v1583_v0 }
 0x124   :  { %v1747_v58 = vpop.f32.mrb[0].mxu0 }
 0x125   :  { %v1326_v59 = vpop.f32.mrb[1].mxu0  ;;  %v1749_v60 = vpop.f32.mrb[0].mxu1  ;;  %v539_v61 = vsel %vm113_vm0, %v1747_v58, -inf }
 0x126   :  { %v1332_v62 = vpop.f32.mrb[1].mxu1  ;;  %540 = vmax.xlane.f32.xlu0 %v539_v61  ;;  %v206_v63 = vpop.f32.mrb[2].mxu0  ;;  %v542_v3 = vsel %vm113_vm0, %v1749_v60, -inf }
 0x127   :  { %v1327_v1 = vpop.f32.mrb[3].mxu0  ;;  %v252_v2 = vpop.f32.mrb[2].mxu1  ;;  %v147_v62 = vld [vmem:[#allocation11 + $0x8] sm:$0xff] }
 0x128   :  { %v1333_v4 = vpop.f32.mrb[3].mxu1  ;;  %v155_v1 = vpack.c.bf16 %v147_v62, %v147_v62  ;;  %v151_v62 = vld [vmem:[#allocation11 + $0x28] sm:$0xff] }
 0x12a   :  { %543 = vmax.xlane.f32.xlu0 %v542_v3  ;;  %v831_v4 = vsel %vm783_vm4, %v155_v1, 0 }
 0x12b   :  { %1377 = vmatpush3.bf16.msra.mxu1 %v831_v4 }
 0x12c   :  { %v1755_v5 = vpop.f32.mrb[4].mxu0  ;;  %1388 = vmatprep.subr.bf16.mxu1 %v1583_v0 }
 0x12d   :  { %v1338_v6 = vpop.f32.mrb[5].mxu0  ;;  %v1757_v7 = vpop.f32.mrb[4].mxu1  ;;  %v545_v8 = vsel %vm113_vm0, %v1755_v5, -inf }
 0x12e   :  { %v1344_v9 = vpop.f32.mrb[5].mxu1  ;;  %546 = vmax.xlane.f32.xlu1 %v545_v8  ;;  %v298_v10 = vpop.f32.mrb[6].mxu0  ;;  %v548_v13 = vsel %vm113_vm0, %v1757_v7, -inf  ;;  %v1841_v6 = vld [vmem:[#allocation3 + $0x30] sm:$0xff]  ;;  %v1845_v8 = vld [vmem:[#allocation3 + $0x38] sm:$0xff] }
 0x12f   :  { %v1339_v11 = vpop.f32.mrb[7].mxu0  ;;  %v344_v12 = vpop.f32.mrb[6].mxu1 }
 0x130   :  { %v1345_v14 = vpop.f32.mrb[7].mxu1 }
 0x132   :  { %549 = vmax.xlane.f32.xlu1 %v548_v13 }
 0x134   :  { %v1763_v15 = vpop.f32.mrb[8].mxu0 }
 0x135   :  { %v1350_v16 = vpop.f32.mrb[9].mxu0  ;;  %v1765_v17 = vpop.f32.mrb[8].mxu1  ;;  %v551_v18 = vsel %vm113_vm0, %v1763_v15, -inf }
 0x136   :  { %v1356_v20 = vpop.f32.mrb[9].mxu1  ;;  %552 = vmax.xlane.f32.xlu0 %v551_v18  ;;  %v390_v21 = vpop.f32.mrb[10].mxu0  ;;  %v554_v22 = vsel %vm113_vm0, %v1765_v17, -inf }
 0x137   :  { %v1351_v23 = vpop.f32.mrb[11].mxu0  ;;  %v436_v24 = vpop.f32.mrb[10].mxu1  ;;  %555 = vmax.xlane.f32.xlu1 %v554_v22 }
 0x138   :  { %v1357_v25 = vpop.f32.mrb[11].mxu1 }
 0x139   :  { %v148_v25 = vld [vmem:[#allocation11 + $0x10] sm:$0xff] }
 0x13c   :  { %v1771_v26 = vpop.f32.mrb[12].mxu0 }
 0x13d   :  { %v1362_v27 = vpop.f32.mrb[13].mxu0  ;;  %v1773_v28 = vpop.f32.mrb[12].mxu1  ;;  %v557_v29 = vsel %vm113_vm0, %v1771_v26, -inf }
 0x13e   :  { %v1368_v30 = vpop.f32.mrb[13].mxu1  ;;  %558 = vmax.xlane.f32.xlu0 %v557_v29  ;;  %v482_v31 = vpop.f32.mrb[14].mxu0  ;;  %v560_v32 = vsel %vm113_vm0, %v1773_v28, -inf }
 0x13f   :  { %v1363_v33 = vpop.f32.mrb[15].mxu0  ;;  %v528_v34 = vpop.f32.mrb[14].mxu1  ;;  %561 = vmax.xlane.f32.xlu1 %v560_v32  ;;  %v156_v30 = vpack.c.bf16 %v148_v25, %v148_v25  ;;  %v149_v32 = vld [vmem:[#allocation11 + $0x18] sm:$0xff] }
 0x140   :  { %v1369_v35 = vpop.f32.mrb[15].mxu1 }
 0x1b3   :  { %v541_v37 = vpop.xlane.xlu0 %540 }
 0x1b4   :  { %v1782_v38 = vmax.f32 %v1779_v36, %v541_v37 }
 0x1b6   :  { %v571_v40 = vsub.f32 %v1779_v36, %v1782_v38  ;;  %1165 = vst.msk [vmem:[#allocation3] sm:$0xff] %vm96_vm3, %v1782_v38  ;;  %597 = vperm.xlu0 %1428, %v1782_v38  }
 0x1b7   :  { %v544_v41 = vpop.xlane.xlu0 %543 }
 0x1b8   :  { %v1792_v42 = vmax.f32 %v1784_v39, %v544_v41  ;;  %v157_v41 = vpack.c.bf16 %v149_v32, %v149_v32 }
 0x1ba   :  { %v572_v44 = vsub.f32 %v1784_v39, %v1792_v42  ;;  %1166 = vst.msk [vmem:[#allocation3 + $0x8] sm:$0xff] %vm96_vm3, %v1792_v42  ;;  %602 = vperm.xlu1 %1429, %v1792_v42   ;;  %v923_v57 = vsel %vm783_vm4, %v157_v41, 0 }
 0x1bb   :  { %v547_v45 = vpop.xlane.xlu1 %546 }
 0x1bc   :  { %v1802_v46 = vmax.f32 %v1794_v43, %v547_v45  ;;  %v150_v45 = vld [vmem:[#allocation11 + $0x20] sm:$0xff] }
 0x1be   :  { %v573_v48 = vsub.f32 %v1794_v43, %v1802_v46  ;;  %1167 = vst.msk [vmem:[#allocation3 + $0x10] sm:$0xff] %vm96_vm3, %v1802_v46  ;;  %607 = vperm.xlu1 %1429, %v1802_v46  }
 0x1bf   :  { %v550_v49 = vpop.xlane.xlu1 %549 }
 0x1c0   :  { %v1812_v50 = vmax.f32 %v1804_v47, %v550_v49 }
 0x1c2   :  { %v574_v54 = vsub.f32 %v1804_v47, %v1812_v50  ;;  %1168 = vst.msk [vmem:[#allocation3 + $0x18] sm:$0xff] %vm96_vm3, %v1812_v50  ;;  %612 = vperm.xlu1 %1429, %v1812_v50  }
 0x1c3   :  { %v553_v56 = vpop.xlane.xlu0 %552 }
 0x1c4   :  { %v1825_v59 = vmax.f32 %v1814_v52, %v553_v56  ;;  %v556_v61 = vpop.xlane.xlu1 %555 }
 0x1c5   :  { %v1828_v63 = vmax.f32 %v1821_v55, %v556_v61  ;;  %v158_v61 = vpack.c.bf16 %v150_v45, %v150_v45 }
 0x1c6   :  { %v575_v2 = vsub.f32 %v1814_v52, %v1825_v59  ;;  %1169 = vst.msk [vmem:[#allocation3 + $0x20] sm:$0xff] %vm96_vm3, %v1825_v59  ;;  %617 = vperm.xlu1 %1429, %v1825_v59  }
 0x1c7   :  { %v576_v3 = vsub.f32 %v1821_v55, %v1828_v63  ;;  %1170 = vst.msk [vmem:[#allocation3 + $0x28] sm:$0xff] %vm96_vm3, %v1828_v63 }
 0x1c8   :  { %v587_v39 = vmul.f32 1.442695, %v575_v2 }
 0x1c9   :  { %v589_v36 = vmul.f32 1.442695, %v576_v3 }
 0x1ca   :  { %622 = vperm.xlu1 %1429, %v1828_v63   ;;  %v660_v63 = vld [vmem:[#allocation4 + $0x8] sm:$0xff] }
 0x1cb   :  { %v559_v9 = vpop.xlane.xlu0 %558 }
 0x1cc   :  { %v1848_v10 = vmax.f32 %v1841_v6, %v559_v9  ;;  %v562_v11 = vpop.xlane.xlu1 %561 }
 0x1cd   :  { %v1851_v12 = vmax.f32 %v1845_v8, %v562_v11 }
 0x1ce   :  { %v577_v13 = vsub.f32 %v1841_v6, %v1848_v10  ;;  %1171 = vst.msk [vmem:[#allocation3 + $0x30] sm:$0xff] %vm96_vm3, %v1848_v10  ;;  %627 = vperm.xlu1 %1429, %v1848_v10  }
 0x1cf   :  { %v578_v14 = vsub.f32 %v1845_v8, %v1851_v12  ;;  %1172 = vst.msk [vmem:[#allocation3 + $0x38] sm:$0xff] %vm96_vm3, %v1851_v12  ;;  %v661_v8 = vld [vmem:[#allocation4 + $0x10] sm:$0xff] }
 0x1d0   :  { %v591_v38 = vmul.f32 1.442695, %v577_v13 }
 0x1d2   :  { %632 = vperm.xlu1 %1429, %v1851_v12  }
 0x235   :  { %v598_v16 = vpop.permute.xlu0 %597 }
 0x236   :  { %v635_v18 = vsub.f32 %v1747_v58, %v598_v16 }
 0x238   :  { %v643_v19 = vmul.f32 1.442695, %v635_v18  ;;  %v969_v18 = vsel %vm783_vm4, %v158_v61, 0  ;;  %v585_v61 = vmul.f32 1.442695, %v574_v54  ;;  %v659_v54 = vld [vmem:[#allocation4] sm:$0xff] }
 0x239   :  { %v603_v20 = vpop.permute.xlu1 %602 }
 0x23a   :  { %1430 = vpow2.f32 %v643_v19  ;;  %v636_v21 = vsub.f32 %v1749_v60, %v603_v20  ;;  %v877_v60 = vsel %vm783_vm4, %v156_v30, 0  ;;  %v159_v19 = vpack.c.bf16 %v151_v62, %v151_v62  ;;  %v152_v20 = vld [vmem:[#allocation11 + $0x30] sm:$0xff]  ;;  %v153_v30 = vld [vmem:[#allocation11 + $0x38] sm:$0xff] }
 0x23c   :  { %v645_v22 = vmul.f32 1.442695, %v636_v21 }
 0x23d   :  { %v608_v23 = vpop.permute.xlu1 %607 }
 0x23e   :  { %1432 = vpow2.f32 %v645_v22  ;;  %v637_v24 = vsub.f32 %v1755_v5, %v608_v23 }
 0x240   :  { %v647_v27 = vmul.f32 1.442695, %v637_v24 }
 0x241   :  { %v613_v29 = vpop.permute.xlu1 %612 }
 0x242   :  { %1434 = vpow2.f32 %v647_v27  ;;  %v638_v31 = vsub.f32 %v1757_v7, %v613_v29  ;;  %v1015_v27 = vsel %vm783_vm4, %v159_v19, 0  ;;  %v160_v29 = vpack.c.bf16 %v152_v20, %v152_v20 }
 0x244   :  { %v1431_v33 = vpop.eup %1430  ;;  %v649_v58 = vmul.f32 1.442695, %v638_v31 }
 0x245   :  { %v618_v34 = vpop.permute.xlu1 %617  ;;  %v675_v35 = vsel %vm113_vm0, %v1431_v33, 0.0  ;;  %v772_v37 = vpack.c.bf16 %v1431_v33, %v1431_v33 }
 0x246   :  { %1436 = vpow2.f32 %v649_v58  ;;  %v639_v5 = vsub.f32 %v1763_v15, %v618_v34  ;;  %676 = vadd.xlane.f32.xlu1 %v675_v35  ;;  %v1061_v34 = vsel %vm783_vm4, %v160_v29, 0  ;;  %v161_v35 = vpack.c.bf16 %v153_v30, %v153_v30 }
 0x247   :  { %1373 = vmatmul.mubr.msk.bf16.vlgmr.msra.gmra.mrb[16].mxu0 %vm113_vm0, %v772_v37 }
 0x248   :  { %v1433_v49 = vpop.eup %1432  ;;  %v651_v51 = vmul.f32 1.442695, %v639_v5  ;;  %1383 = vmatpush3.bf16.msra.mxu0 %v877_v60  ;;  %1384 = vmatprep.mubr.msk.bf16.mxu0 %vm1584_vm1, %v1583_v0  ;;  %v1107_v41 = vsel %vm783_vm4, %v161_v35, 0 }
 0x249   :  { %v623_v7 = vpop.permute.xlu1 %622  ;;  %v678_v53 = vsel %vm113_vm0, %v1433_v49, 0.0  ;;  %v773_v56 = vpack.c.bf16 %v1433_v49, %v1433_v49  ;;  %1394 = vmatprep.subr.bf16.mxu0 %v1583_v0 }
 0x24a   :  { %1438 = vpow2.f32 %v651_v51  ;;  %v640_v15 = vsub.f32 %v1765_v17, %v623_v7  ;;  %679 = vadd.xlane.f32.xlu0 %v678_v53 }
 0x24b   :  { %1379 = vmatmul.mubr.msk.bf16.vlgmr.msra.gmra.mrb[16].mxu1 %vm113_vm0, %v773_v56  ;;  %v581_v56 = vmul.f32 1.442695, %v572_v44 }
 0x24c   :  { %v1435_v1 = vpop.eup %1434  ;;  %v653_v4 = vmul.f32 1.442695, %v640_v15  ;;  %1389 = vmatpush3.bf16.msra.mxu1 %v923_v57  ;;  %1390 = vmatprep.mubr.msk.bf16.mxu1 %vm1584_vm1, %v1583_v0  ;;  %v583_v57 = vmul.f32 1.442695, %v573_v48 }
 0x24d   :  { %v628_v9 = vpop.permute.xlu1 %627  ;;  %v681_v11 = vsel %vm113_vm0, %v1435_v1, 0.0  ;;  %v774_v16 = vpack.c.bf16 %v1435_v1, %v1435_v1  ;;  %1400 = vmatprep.subr.bf16.mxu1 %v1583_v0 }
 0x24e   :  { %1440 = vpow2.f32 %v653_v4  ;;  %v641_v17 = vsub.f32 %v1771_v26, %v628_v9  ;;  %682 = vadd.xlane.f32.xlu0 %v681_v11  ;;  %v663_v9 = vld [vmem:[#allocation4 + $0x20] sm:$0xff] }
 0x24f   :  { %1385 = vmatmul.mubr.msk.bf16.vlgmr.msra.gmra.mrb[20].mxu0 %vm113_vm0, %v774_v16 }
 0x250   :  { %v1437_v21 = vpop.eup %1436  ;;  %v655_v22 = vmul.f32 1.442695, %v641_v17  ;;  %1395 = vmatpush3.bf16.msra.mxu0 %v969_v18  ;;  %1396 = vmatprep.mubr.msk.bf16.mxu0 %vm1584_vm1, %v1583_v0  ;;  %v664_v17 = vld [vmem:[#allocation4 + $0x28] sm:$0xff] }
 0x251   :  { %v633_v23 = vpop.permute.xlu1 %632  ;;  %v684_v24 = vsel %vm113_vm0, %v1437_v21, 0.0  ;;  %v775_v25 = vpack.c.bf16 %v1437_v21, %v1437_v21  ;;  %1406 = vmatprep.subr.bf16.mxu0 %v1583_v0 }
 0x252   :  { %1442 = vpow2.f32 %v655_v22  ;;  %v642_v26 = vsub.f32 %v1773_v28, %v633_v23  ;;  %685 = vadd.xlane.f32.xlu1 %v684_v24  ;;  %v665_v24 = vld [vmem:[#allocation4 + $0x30] sm:$0xff] }
 0x253   :  { %1391 = vmatmul.mubr.msk.bf16.vlgmr.msra.gmra.mrb[20].mxu1 %vm113_vm0, %v775_v25 }
 0x254   :  { %v1439_v31 = vpop.eup %1438  ;;  %v657_v32 = vmul.f32 1.442695, %v642_v26  ;;  %1401 = vmatpush3.bf16.msra.mxu1 %v1015_v27  ;;  %1402 = vmatprep.mubr.msk.bf16.mxu1 %vm1584_vm1, %v1583_v0 }
 0x255   :  { %v687_v33 = vsel %vm113_vm0, %v1439_v31, 0.0  ;;  %v776_v58 = vpack.c.bf16 %v1439_v31, %v1439_v31  ;;  %1412 = vmatprep.subr.bf16.mxu1 %v1583_v0  ;;  %v666_v31 = vld [vmem:[#allocation4 + $0x38] sm:$0xff] }
 0x256   :  { %1444 = vpow2.f32 %v657_v32  ;;  %688 = vadd.xlane.f32.xlu0 %v687_v33 }
 0x257   :  { %1397 = vmatmul.mubr.msk.bf16.vlgmr.msra.gmra.mrb[24].mxu0 %vm113_vm0, %v776_v58  ;;  %1446 = vpow2.f32 %v581_v56  ;;  %v716_v56 = vld [vmem:[#allocation5] sm:$0xff] }
 0x258   :  { %v1441_v28 = vpop.eup %1440  ;;  %1407 = vmatpush3.bf16.msra.mxu0 %v1061_v34  ;;  %1408 = vmatprep.mubr.msk.bf16.mxu0 %vm1584_vm1, %v1583_v0 }
 0x259   :  { %v690_v37 = vsel %vm113_vm0, %v1441_v28, 0.0  ;;  %v777_v60 = vpack.c.bf16 %v1441_v28, %v1441_v28 }
 0x25a   :  { %691 = vadd.xlane.f32.xlu1 %v690_v37 }
 0x25b   :  { %1403 = vmatmul.mubr.msk.bf16.vlgmr.msra.gmra.mrb[24].mxu1 %vm113_vm0, %v777_v60 }
 0x25c   :  { %v1443_v5 = vpop.eup %1442  ;;  %1413 = vmatpush3.bf16.msra.mxu1 %v1107_v41  ;;  %1414 = vmatprep.mubr.msk.bf16.mxu1 %vm1584_vm1, %v1583_v0  ;;  %v579_v0 = vmul.f32 1.442695, %v571_v40  ;;  %v593_v40 = vmul.f32 1.442695, %v578_v14  ;;  %v662_v14 = vld [vmem:[#allocation4 + $0x18] sm:$0xff] }
 0x25d   :  { %v693_v45 = vsel %vm113_vm0, %v1443_v5, 0.0  ;;  %v778_v49 = vpack.c.bf16 %v1443_v5, %v1443_v5 }
 0x25e   :  { %694 = vadd.xlane.f32.xlu0 %v693_v45  ;;  %1448 = vpow2.f32 %v579_v0 }
 0x25f   :  { %1409 = vmatmul.mubr.msk.bf16.vlgmr.msra.gmra.mrb[28].mxu0 %vm113_vm0, %v778_v49  ;;  %1450 = vpow2.f32 %v583_v57 }
 0x260   :  { %v1445_v51 = vpop.eup %1444  ;;  %1452 = vpow2.f32 %v585_v61 }
 0x261   :  { %v696_v7 = vsel %vm113_vm0, %v1445_v51, 0.0  ;;  %v779_v53 = vpack.c.bf16 %v1445_v51, %v1445_v51  ;;  %1454 = vpow2.f32 %v587_v39  ;;  %v1447_v42 = vpop.eup %1446  ;;  %v717_v39 = vld [vmem:[#allocation5 + $0x8] sm:$0xff] }
 0x262   :  { %697 = vadd.xlane.f32.xlu1 %v696_v7  ;;  %1456 = vpow2.f32 %v589_v36  ;;  %v668_v3 = vmul.f32 %v1447_v42, %v660_v63  ;;  %v719_v63 = vld [vmem:[#allocation5 + $0x18] sm:$0xff] }
 0x263   :  { %1415 = vmatmul.mubr.msk.bf16.vlgmr.msra.gmra.mrb[28].mxu1 %vm113_vm0, %v779_v53  ;;  %1458 = vpow2.f32 %v591_v38 }
 0x264   :  { %1460 = vpow2.f32 %v593_v40 }
 0x268   :  { %v1449_v43 = vpop.eup %1448 }
 0x269   :  { %v1451_v44 = vpop.eup %1450  ;;  %v667_v55 = vmul.f32 %v1449_v43, %v659_v54 }
 0x26a   :  { %v1453_v46 = vpop.eup %1452  ;;  %v669_v12 = vmul.f32 %v1451_v44, %v661_v8 }
 0x26b   :  { %v1455_v47 = vpop.eup %1454  ;;  %v670_v1 = vmul.f32 %v1453_v46, %v662_v14  ;;  %v720_v14 = vld [vmem:[#allocation5 + $0x20] sm:$0xff] }
 0x26c   :  { %v1457_v48 = vpop.eup %1456  ;;  %v671_v18 = vmul.f32 %v1455_v47, %v663_v9 }
 0x26d   :  { %v1459_v50 = vpop.eup %1458  ;;  %v672_v22 = vmul.f32 %v1457_v48, %v664_v17 }
 0x26e   :  { %v1461_v52 = vpop.eup %1460  ;;  %v673_v26 = vmul.f32 %v1459_v50, %v665_v24 }
 0x26f   :  { %v674_v34 = vmul.f32 %v1461_v52, %v666_v31 }
 0x273   :  { %731 = vperm.xlu1 %1429, %v1447_v42  }
 0x274   :  { %726 = vperm.xlu0 %1428, %v1449_v43  }
 0x277   :  { %736 = vperm.xlu1 %1429, %v1451_v44  }
 0x278   :  { %741 = vperm.xlu0 %1428, %v1453_v46   ;;  %v718_v46 = vld [vmem:[#allocation5 + $0x10] sm:$0xff] }
 0x27b   :  { %746 = vperm.xlu1 %1429, %v1455_v47  }
 0x27c   :  { %751 = vperm.xlu0 %1428, %v1457_v48  }
 0x27f   :  { %756 = vperm.xlu1 %1429, %v1459_v50  }
 0x280   :  { %761 = vperm.xlu0 %1428, %v1461_v52  }
 0x2d3   :  { %v677_v59 = vpop.xlane.xlu1 %676 }
 0x2d4   :  { %v699_v2 = vadd.f32 %v677_v59, %v667_v55 }
 0x2d6   :  { %708 = vst.msk [vmem:[#allocation4] sm:$0xff] %vm96_vm3, %v699_v2 }
 0x2d7   :  { %v680_v6 = vpop.xlane.xlu0 %679 }
 0x2d8   :  { %v700_v10 = vadd.f32 %v680_v6, %v668_v3 }
 0x2da   :  { %709 = vst.msk [vmem:[#allocation4 + $0x8] sm:$0xff] %vm96_vm3, %v700_v10 }
 0x2db   :  { %v683_v13 = vpop.xlane.xlu0 %682 }
 0x2dc   :  { %v701_v15 = vadd.f32 %v683_v13, %v669_v12 }
 0x2dd   :  { %v1176_v62 = vld [vmem:[#allocation4] sm:$0xff] }
 0x2de   :  { %710 = vst.msk [vmem:[#allocation4 + $0x10] sm:$0xff] %vm96_vm3, %v701_v15  ;;  %1462 = vrcp.f32 %v1176_v62 }
 0x2df   :  { %v686_v4 = vpop.xlane.xlu1 %685 }
 0x2e0   :  { %v702_v11 = vadd.f32 %v686_v4, %v670_v1 }
 0x2e1   :  { %v1177_v16 = vld [vmem:[#allocation4 + $0x8] sm:$0xff] }
 0x2e2   :  { %711 = vst.msk [vmem:[#allocation4 + $0x18] sm:$0xff] %vm96_vm3, %v702_v11  ;;  %1464 = vrcp.f32 %v1177_v16 }
 0x2e3   :  { %v689_v19 = vpop.xlane.xlu0 %688 }
 0x2e4   :  { %v703_v20 = vadd.f32 %v689_v19, %v671_v18  ;;  %v721_v18 = vld [vmem:[#allocation5 + $0x28] sm:$0xff] }
 0x2e5   :  { %v1178_v21 = vld [vmem:[#allocation4 + $0x10] sm:$0xff] }
 0x2e6   :  { %712 = vst.msk [vmem:[#allocation4 + $0x20] sm:$0xff] %vm96_vm3, %v703_v20  ;;  %1466 = vrcp.f32 %v1178_v21 }
 0x2e7   :  { %v692_v23 = vpop.xlane.xlu1 %691 }
 0x2e8   :  { %v1463_v25 = vpop.eup %1462  ;;  %v704_v27 = vadd.f32 %v692_v23, %v672_v22 }
 0x2e9   :  { %1202 = vperm.xlu1 %1429, %v1463_v25   ;;  %v1179_v29 = vld [vmem:[#allocation4 + $0x18] sm:$0xff]  ;;  %v722_v25 = vld [vmem:[#allocation5 + $0x30] sm:$0xff] }
 0x2ea   :  { %713 = vst.msk [vmem:[#allocation4 + $0x28] sm:$0xff] %vm96_vm3, %v704_v27  ;;  %1468 = vrcp.f32 %v1179_v29 }
 0x2eb   :  { %v695_v30 = vpop.xlane.xlu0 %694 }
 0x2ec   :  { %v1465_v32 = vpop.eup %1464  ;;  %v705_v33 = vadd.f32 %v695_v30, %v673_v26 }
 0x2ed   :  { %1207 = vperm.xlu0 %1428, %v1465_v32   ;;  %v1180_v58 = vld [vmem:[#allocation4 + $0x20] sm:$0xff] }
 0x2ee   :  { %714 = vst.msk [vmem:[#allocation4 + $0x30] sm:$0xff] %vm96_vm3, %v705_v33  ;;  %1470 = vrcp.f32 %v1180_v58  ;;  %v723_v58 = vld [vmem:[#allocation5 + $0x38] sm:$0xff] }
 0x2ef   :  { %v698_v35 = vpop.xlane.xlu1 %697 }
 0x2f0   :  { %v1467_v28 = vpop.eup %1466  ;;  %v706_v37 = vadd.f32 %v698_v35, %v674_v34 }
 0x2f1   :  { %1212 = vperm.xlu1 %1429, %v1467_v28   ;;  %v1181_v60 = vld [vmem:[#allocation4 + $0x28] sm:$0xff] }
 0x2f2   :  { %715 = vst.msk [vmem:[#allocation4 + $0x38] sm:$0xff] %vm96_vm3, %v706_v37  ;;  %1472 = vrcp.f32 %v1181_v60 }
 0x2f3   :  { %v727_v0 = vpop.permute.xlu0 %726  ;;  %v732_v57 = vpop.permute.xlu1 %731 }
 0x2f4   :  { %v1469_v41 = vpop.eup %1468  ;;  %v764_v61 = vmul.f32 %v727_v0, %v716_v56  ;;  %v765_v43 = vmul.f32 %v732_v57, %v717_v39 }
 0x2f5   :  { %1217 = vperm.xlu0 %1428, %v1469_v41   ;;  %v1182_v5 = vld [vmem:[#allocation4 + $0x30] sm:$0xff] }
 0x2f6   :  { %1474 = vrcp.f32 %v1182_v5 }
 0x2f7   :  { %v737_v47 = vpop.permute.xlu1 %736  ;;  %v742_v2 = vpop.permute.xlu0 %741 }
 0x2f8   :  { %v1471_v45 = vpop.eup %1470  ;;  %v766_v55 = vmul.f32 %v737_v47, %v718_v46  ;;  %v767_v12 = vmul.f32 %v742_v2, %v719_v63 }
 0x2f9   :  { %1222 = vperm.xlu1 %1429, %v1471_v45   ;;  %v1183_v49 = vld [vmem:[#allocation4 + $0x38] sm:$0xff] }
 0x2fa   :  { %1476 = vrcp.f32 %v1183_v49 }
 0x2fb   :  { %v747_v15 = vpop.permute.xlu1 %746  ;;  %v752_v19 = vpop.permute.xlu0 %751 }
 0x2fc   :  { %v1473_v51 = vpop.eup %1472  ;;  %v768_v11 = vmul.f32 %v747_v15, %v720_v14  ;;  %v769_v23 = vmul.f32 %v752_v19, %v721_v18 }
 0x2fd   :  { %1227 = vperm.xlu0 %1428, %v1473_v51  }
 0x2ff   :  { %v757_v27 = vpop.permute.xlu1 %756  ;;  %v762_v34 = vpop.permute.xlu0 %761 }
 0x300   :  { %v1475_v7 = vpop.eup %1474  ;;  %v770_v32 = vmul.f32 %v757_v27, %v722_v25  ;;  %v771_v41 = vmul.f32 %v762_v34, %v723_v58 }
 0x301   :  { %1232 = vperm.xlu1 %1429, %v1475_v7  }
 0x304   :  { %v1477_v53 = vpop.eup %1476 }
 0x305   :  { %1237 = vperm.xlu0 %1428, %v1477_v53  }
 0x31a   :  { %v821_v36 = vpop.f32.mrb[16].mxu0 }
 0x31b   :  { %v1149_v38 = vadd.f32 %v821_v36, %v764_v61  ;;  %v1374_v40 = vpop.f32.mrb[17].mxu0 }
 0x31c   :  { %v824_v42 = vpop.f32.mrb[18].mxu0 }
 0x31d   :  { %1157 = vst.msk [vmem:[#allocation5] sm:$0xff] %vm113_vm0, %v1149_v38  ;;  %v1375_v44 = vpop.f32.mrb[19].mxu0 }
 0x31e   :  { %v867_v48 = vpop.f32.mrb[16].mxu1 }
 0x31f   :  { %v1150_v50 = vadd.f32 %v867_v48, %v765_v43  ;;  %v1380_v52 = vpop.f32.mrb[17].mxu1 }
 0x320   :  { %v870_v54 = vpop.f32.mrb[18].mxu1 }
 0x321   :  { %1158 = vst.msk [vmem:[#allocation5 + $0x8] sm:$0xff] %vm113_vm0, %v1150_v50  ;;  %v1381_v59 = vpop.f32.mrb[19].mxu1 }
 0x322   :  { %v913_v3 = vpop.f32.mrb[20].mxu0 }
 0x323   :  { %v1151_v6 = vadd.f32 %v913_v3, %v766_v55  ;;  %v1386_v8 = vpop.f32.mrb[21].mxu0 }
 0x324   :  { %v916_v10 = vpop.f32.mrb[22].mxu0  ;;  %v1192_v0 = vld [vmem:[#allocation5] sm:$0xff] }
 0x325   :  { %1159 = vst.msk [vmem:[#allocation5 + $0x10] sm:$0xff] %vm113_vm0, %v1151_v6  ;;  %v1387_v13 = vpop.f32.mrb[23].mxu0 }
 0x326   :  { %v959_v62 = vpop.f32.mrb[20].mxu1 }
 0x327   :  { %v1152_v1 = vadd.f32 %v959_v62, %v767_v12  ;;  %v1392_v4 = vpop.f32.mrb[21].mxu1 }
 0x328   :  { %v962_v9 = vpop.f32.mrb[22].mxu1  ;;  %v1193_v61 = vld [vmem:[#allocation5 + $0x8] sm:$0xff] }
 0x329   :  { %1160 = vst.msk [vmem:[#allocation5 + $0x18] sm:$0xff] %vm113_vm0, %v1152_v1  ;;  %v1393_v16 = vpop.f32.mrb[23].mxu1 }
 0x32a   :  { %v1005_v17 = vpop.f32.mrb[24].mxu0 }
 0x32b   :  { %v1153_v20 = vadd.f32 %v1005_v17, %v768_v11  ;;  %v1398_v21 = vpop.f32.mrb[25].mxu0 }
 0x32c   :  { %v1008_v22 = vpop.f32.mrb[26].mxu0  ;;  %v1194_v40 = vld [vmem:[#allocation5 + $0x10] sm:$0xff] }
 0x32d   :  { %1161 = vst.msk [vmem:[#allocation5 + $0x20] sm:$0xff] %vm113_vm0, %v1153_v20  ;;  %v1399_v24 = vpop.f32.mrb[27].mxu0 }
 0x32e   :  { %v1051_v29 = vpop.f32.mrb[24].mxu1 }
 0x32f   :  { %v1154_v26 = vadd.f32 %v1051_v29, %v769_v23  ;;  %v1404_v30 = vpop.f32.mrb[25].mxu1 }
 0x330   :  { %v1054_v31 = vpop.f32.mrb[26].mxu1  ;;  %v1195_v43 = vld [vmem:[#allocation5 + $0x18] sm:$0xff] }
 0x331   :  { %1162 = vst.msk [vmem:[#allocation5 + $0x28] sm:$0xff] %vm113_vm0, %v1154_v26  ;;  %v1405_v33 = vpop.f32.mrb[27].mxu1 }
 0x332   :  { %v1097_v35 = vpop.f32.mrb[28].mxu0 }
 0x333   :  { %v1155_v28 = vadd.f32 %v1097_v35, %v770_v32  ;;  %v1410_v37 = vpop.f32.mrb[29].mxu0 }
 0x334   :  { %v1100_v60 = vpop.f32.mrb[30].mxu0  ;;  %v1196_v48 = vld [vmem:[#allocation5 + $0x20] sm:$0xff] }
 0x335   :  { %1163 = vst.msk [vmem:[#allocation5 + $0x30] sm:$0xff] %vm113_vm0, %v1155_v28  ;;  %v1411_v5 = vpop.f32.mrb[31].mxu0 }
 0x336   :  { %v1143_v45 = vpop.f32.mrb[28].mxu1 }
 0x337   :  { %v1156_v49 = vadd.f32 %v1143_v45, %v771_v41  ;;  %v1416_v51 = vpop.f32.mrb[29].mxu1 }
 0x338   :  { %v1146_v7 = vpop.f32.mrb[30].mxu1  ;;  %v1197_v52 = vld [vmem:[#allocation5 + $0x28] sm:$0xff] }
 0x339   :  { %1164 = vst.msk [vmem:[#allocation5 + $0x38] sm:$0xff] %vm113_vm0, %v1156_v49  ;;  %v1417_v53 = vpop.f32.mrb[31].mxu1 }
 0x33c   :  { %v1198_v63 = vld [vmem:[#allocation5 + $0x30] sm:$0xff] }
 0x340   :  { %v1199_v3 = vld [vmem:[#allocation5 + $0x38] sm:$0xff] }
 0x368   :  { %v1203_v56 = vpop.permute.xlu1 %1202 }
 0x369   :  { %v1240_v57 = vmul.f32 %v1203_v56, %v1192_v0 }
 0x36b   :  { %1248 = vst.msk [vmem:[#allocation12] sm:$0xff] %vm113_vm0, %v1240_v57 }
 0x36c   :  { %v1208_v39 = vpop.permute.xlu0 %1207 }
 0x36d   :  { %v1241_v36 = vmul.f32 %v1208_v39, %v1193_v61 }
 0x36f   :  { %1249 = vst.msk [vmem:[#allocation12 + $0x8] sm:$0xff] %vm113_vm0, %v1241_v36 }
 0x370   :  { %v1213_v38 = vpop.permute.xlu1 %1212 }
 0x371   :  { %v1242_v42 = vmul.f32 %v1213_v38, %v1194_v40 }
 0x373   :  { %1250 = vst.msk [vmem:[#allocation12 + $0x10] sm:$0xff] %vm113_vm0, %v1242_v42 }
 0x374   :  { %v1218_v44 = vpop.permute.xlu0 %1217 }
 0x375   :  { %v1243_v46 = vmul.f32 %v1218_v44, %v1195_v43 }
 0x377   :  { %1251 = vst.msk [vmem:[#allocation12 + $0x18] sm:$0xff] %vm113_vm0, %v1243_v46 }
 0x378   :  { %v1223_v47 = vpop.permute.xlu1 %1222 }
 0x379   :  { %v1244_v50 = vmul.f32 %v1223_v47, %v1196_v48 }
 0x37b   :  { %1252 = vst.msk [vmem:[#allocation12 + $0x20] sm:$0xff] %vm113_vm0, %v1244_v50 }
 0x37c   :  { %v1228_v54 = vpop.permute.xlu0 %1227 }
 0x37d   :  { %v1245_v55 = vmul.f32 %v1228_v54, %v1197_v52 }
 0x37f   :  { %1253 = vst.msk [vmem:[#allocation12 + $0x28] sm:$0xff] %vm113_vm0, %v1245_v55 }
 0x380   :  { %v1233_v59 = vpop.permute.xlu1 %1232 }
 0x381   :  { %v1246_v2 = vmul.f32 %v1233_v59, %v1198_v63 }
 0x383   :  { %1254 = vst.msk [vmem:[#allocation12 + $0x30] sm:$0xff] %vm113_vm0, %v1246_v2 }
 0x384   :  { %v1238_v6 = vpop.permute.xlu0 %1237 }
 0x385   :  { %v1247_v8 = vmul.f32 %v1238_v6, %v1199_v3 }
 0x387   :  { %1255 = vst.msk [vmem:[#allocation12 + $0x38] sm:$0xff] %vm113_vm0, %v1247_v8 }
 0x388   :  { %1561 = shalt.err (!%p1558_p10)
}
 0x389   :  { %s1562_s30 = scalar_lea.hbm %s1975_s3, 1024 }
 0x38a   :  { %p1563_p11 = scmp.ne.s32.totalorder %s1975_s3, %s1562_s30  ;;  %p1566_p12 = scmp.lt.u32.totalorder %s1562_s30, %s1975_s3 }
 0x38c   :  { %p1568_p13 = pnand %p1566_p12, %p1563_p11 }
 0x38e   :  { %1571 = shalt.err (!%p1568_p13)
}
 0x38f   :  { %1267 = dma.vmem_to_hbm [thread:$0]  %s1262_s18, 1024, %s1975_s3, [#allocation8], %s1580_s28, %s1580_s28, %s1581_s29  }
 0x390   :  { %1576 = dma.done.wait [#allocation8], 1024  }
 0x391   :  { %1577 = vsyncadd [#allocation8], 4294966272 }
 0x392   :  { %1271 = vsyncpa [#allocation7], 1 }
 0x393   :  { %1272 = vsyncpa [#allocation10], 1 }
 0x394   :  { %1273 = vsyncpa [#allocation8], 1 }

</bundles_post_ra>
